<compile_context>
chip_gen: v7x
topology: tpu7x:2x2x1
jax: 0.10.0
libtpu: 0.0.40
codegen_flags: <defaults>
</compile_context>

<pallas_src>
import functools

import jax
import jax.numpy as jnp
from jax.experimental import pallas as pl
from jax.experimental.pallas import tpu as pltpu


def _round_up(x, m):
    return (x + m - 1) // m * m


_MIN_GRID_STEPS = 8  # >=4 steps per TensorCore on v7x (2 TCs) + DMA/compute overlap


def _choose_tile_rows(rows, max_tile_rows):
    """Pick a tile row count (multiple of 8) for a `rows` x 128 point slab.

    Aims for ~_MIN_GRID_STEPS grid steps (v7x megacore sharding + pipelining)
    while letting tiles grow to `max_tile_rows` (default 2048 -> ~4 MiB/step,
    ~85% of HBM streaming roofline, within every generation's scoped-VMEM
    default when double-buffered).
    """
    cap = max(8, (int(max_tile_rows) // 8) * 8)          # enforce (8,128) rule
    rows8 = _round_up(max(int(rows), 1), 8)
    want = _round_up(-(-rows8 // _MIN_GRID_STEPS), 8)     # ~rows/8 per step
    return max(8, min(cap, want))


def _pack_params(center, side_lengths):
    return jnp.concatenate([
        jnp.asarray(center, jnp.float32).reshape(3),
        jnp.asarray(side_lengths, jnp.float32).reshape(3) * 0.5,
    ])


def _box_sdf_kernel(params_ref, p_ref, o_ref):
    # params_ref: (6,) f32 in SMEM  -> [cx, cy, cz, hx, hy, hz]  (h = side/2)
    # p_ref:      (3, TR, 128) f32 in VMEM, coordinate-planar, lane-dense
    # o_ref:      (TR, 128) f32 in VMEM
    x = p_ref[0]                                          # (TR, 128)
    y = p_ref[1]
    z = p_ref[2]

    dx = jnp.abs(x - params_ref[0]) - params_ref[3]
    dy = jnp.abs(y - params_ref[1]) - params_ref[4]
    dz = jnp.abs(z - params_ref[2]) - params_ref[5]

    # Clamped squares computed directly from dx/dy/dz (no extra live vregs);
    # sqrt goes to the EUP slot, everything else is VPU elementwise.
    sq = (jnp.square(jnp.maximum(dx, 0.0))
          + jnp.square(jnp.maximum(dy, 0.0))
          + jnp.square(jnp.maximum(dz, 0.0)))
    outside = jnp.sqrt(sq)
    inside = jnp.minimum(jnp.maximum(jnp.maximum(dx, dy), dz), 0.0)

    o_ref[...] = outside + inside


def _box_sdf_planar_call(pts_planar, params, *, tile_rows):
    """pts_planar: (3, rows_pad, 128) f32 with rows_pad % tile_rows == 0."""
    _, rows_pad, _ = pts_planar.shape
    grid = (rows_pad // tile_rows,)
    return pl.pallas_call(
        _box_sdf_kernel,
        out_shape=jax.ShapeDtypeStruct((rows_pad, 128), jnp.float32),
        grid_spec=pltpu.PrefetchScalarGridSpec(
            num_scalar_prefetch=0,
            grid=grid,
            in_specs=[
                # 6 scalar params live in SMEM -- no padded VMEM block / DMA.
                pl.BlockSpec(memory_space=pltpu.MemorySpace.SMEM),
                # Streaming input: dense (3, TR, 128) blocks.
                pl.BlockSpec((3, tile_rows, 128), lambda i: (0, i, 0)),
            ],
            out_specs=pl.BlockSpec((tile_rows, 128), lambda i: (i, 0)),
        ),
        compiler_params=pltpu.CompilerParams(
            dimension_semantics=("parallel",)),
    )(params, pts_planar)


@functools.partial(jax.jit, static_argnames=("max_tile_rows",))
def box_sdf_planar(pts_planar, center, side_lengths, *, max_tile_rows=2048):
    """Fast path. pts_planar: (3, rows, 128) f32 coordinate planes.

    Returns the dense (rows, 128) SDF slab; point k lives at slab[k//128, k%128].
    No layout conversion, no output slicing -- pure streaming kernel.
    """
    three, rows, lanes = pts_planar.shape
    assert three == 3 and lanes == 128, pts_planar.shape
    params = _pack_params(center, side_lengths)
    tile_rows = _choose_tile_rows(rows, max_tile_rows)
    rows_pad = _round_up(rows, tile_rows)
    x = pts_planar.astype(jnp.float32)
    if rows_pad != rows:
        x = jnp.pad(x, ((0, 0), (0, rows_pad - rows), (0, 0)))
    out = _box_sdf_planar_call(x, params, tile_rows=tile_rows)
    return out[:rows] if rows_pad != rows else out


@functools.partial(jax.jit, static_argnames=("max_tile_rows",))
def box_sdf(points, center, side_lengths, *, max_tile_rows=2048):
    """PyTorch-compatible entry: points (..., 3) -> signed distance (N, 1)."""
    pts = points.reshape(-1, 3).astype(jnp.float32)       # (N, 3)
    n = pts.shape[0]
    if n == 0:
        return jnp.zeros((0, 1), jnp.float32)
    params = _pack_params(center, side_lengths)

    rows = -(-n // 128)                                   # 128-point rows
    tile_rows = _choose_tile_rows(rows, max_tile_rows)
    rows_pad = _round_up(rows, tile_rows)
    n_pad = rows_pad * 128

    # TODO(synk): this pad+transpose into the (3, rows, 128) planar layout is
    # one extra XLA copy (~24 B/point HBM traffic on top of the kernel's ~16);
    # callers that can keep points coordinate-planar end-to-end should call
    # box_sdf_planar directly.
    if n_pad != n:
        pts = jnp.pad(pts, ((0, n_pad - n), (0, 0)))
    pts_planar = jnp.transpose(pts.reshape(rows_pad, 128, 3), (2, 0, 1))

    out = _box_sdf_planar_call(pts_planar, params, tile_rows=tile_rows)

    if n_pad == n:
        # Free contiguous reshape: no slice copy when N is already aligned.
        return out.reshape(-1, 1)
    return out.reshape(-1)[:n].reshape(-1, 1)


def box_sdf_ref(points, center, side_lengths):
    pts = points.reshape(-1, 3).astype(jnp.float32)
    diff = jnp.abs(pts - center.reshape(1, 3)) - side_lengths.reshape(1, 3) / 2.0
    sd = (jnp.linalg.norm(jnp.maximum(diff, 0.0), axis=-1)
          + jnp.minimum(jnp.max(diff, axis=-1), 0.0))
    return sd[:, None]


if __name__ == "__main__":
    key = jax.random.PRNGKey(0)
    k1, k2, k3 = jax.random.split(key, 3)

    # Deterministic "config" parameters (cfg.center.val, cfg.side_lengths.val),
    # shaped (1, 3) just like the nn.Parameter after .unsqueeze(0).
    center = jnp.array([[0.1, -0.2, 0.3]], dtype=jnp.float32)
    side_lengths = jnp.array([[1.0, 1.5, 0.5]], dtype=jnp.float32)

    # 1) Module-shaped input: batch=2, seq=128 points, 3 coords -> N = 256.
    points = jax.random.uniform(k1, (2, 128, 3), jnp.float32, -1.0, 1.0)
    out = jax.block_until_ready(box_sdf(points, center, side_lengths))
    ref = box_sdf_ref(points, center, side_lengths)
    assert out.shape == (256, 1), out.shape
    assert jnp.allclose(out, ref, atol=1e-5, rtol=1e-5), \
        float(jnp.max(jnp.abs(out - ref)))

    # 2) N not a multiple of 128 + forced multi-step grid (padding, slicing,
    #    index-map coverage). Tiny tiles only to force grid > 1.
    points2 = jax.random.uniform(k2, (2, 600, 3), jnp.float32, -2.0, 2.0)
    out2 = jax.block_until_ready(
        box_sdf(points2, center, side_lengths, max_tile_rows=8))
    ref2 = box_sdf_ref(points2, center, side_lengths)
    assert out2.shape == (1200, 1), out2.shape
    assert jnp.allclose(out2, ref2, atol=1e-5, rtol=1e-5), \
        float(jnp.max(jnp.abs(out2 - ref2)))

    # 3) Planar fast path: no wrapper pad/transpose/slice at all.
    pts_planar = jax.random.uniform(k3, (3, 16, 128), jnp.float32, -2.0, 2.0)
    slab = jax.block_until_ready(box_sdf_planar(pts_planar, center, side_lengths))
    pts_flat = jnp.transpose(pts_planar, (1, 2, 0)).reshape(-1, 3)
    ref3 = box_sdf_ref(pts_flat, center, side_lengths)
    assert slab.shape == (16, 128), slab.shape
    assert jnp.allclose(slab.reshape(-1, 1), ref3, atol=1e-5, rtol=1e-5), \
        float(jnp.max(jnp.abs(slab.reshape(-1, 1) - ref3)))

    print("KERNEL_OK")
</pallas_src>

<mosaic_0001>
module attributes {stable_mosaic.version = 11 : i64} {
  func.func @_box_sdf_kernel(%arg0: i32, %arg1: memref<6xf32, #tpu.memory_space<smem>>, %arg2: memref<3x8x128xf32, #tpu.memory_space<vmem>>, %arg3: memref<8x128xf32, #tpu.memory_space<vmem>>) attributes {dimension_semantics = [#tpu.dimension_semantics<parallel>], iteration_bounds = array<i64: 1>, scalar_prefetch = 0 : i64, scratch_operands = 0 : i64, tpu.core_type = #tpu.core_type<tc>, window_params = [{transform_indices = @transform_0, window_bounds = array<i64: 6>}, {transform_indices = @transform_1, window_bounds = array<i64: 3, 8, 128>}, {transform_indices = @transform_2, window_bounds = array<i64: 8, 128>}]} {
    %c0 = arith.constant 0 : index
    %c0_0 = arith.constant 0 : index
    %c0_1 = arith.constant 0 : index
    %0 = vector.load %arg2[%c0, %c0_0, %c0_1] : memref<3x8x128xf32, #tpu.memory_space<vmem>>, vector<1x8x128xf32>
    %1 = vector.shape_cast %0 : vector<1x8x128xf32> to vector<8x128xf32>
    %c1 = arith.constant 1 : index
    %c0_2 = arith.constant 0 : index
    %c0_3 = arith.constant 0 : index
    %2 = vector.load %arg2[%c1, %c0_2, %c0_3] : memref<3x8x128xf32, #tpu.memory_space<vmem>>, vector<1x8x128xf32>
    %3 = vector.shape_cast %2 : vector<1x8x128xf32> to vector<8x128xf32>
    %c2 = arith.constant 2 : index
    %c0_4 = arith.constant 0 : index
    %c0_5 = arith.constant 0 : index
    %4 = vector.load %arg2[%c2, %c0_4, %c0_5] : memref<3x8x128xf32, #tpu.memory_space<vmem>>, vector<1x8x128xf32>
    %5 = vector.shape_cast %4 : vector<1x8x128xf32> to vector<8x128xf32>
    %c0_6 = arith.constant 0 : index
    %6 = memref.load %arg1[%c0_6] : memref<6xf32, #tpu.memory_space<smem>>
    %7 = vector.broadcast %6 : f32 to vector<8x128xf32>
    %8 = arith.subf %1, %7 : vector<8x128xf32>
    %9 = math.absf %8 : vector<8x128xf32>
    %c3 = arith.constant 3 : index
    %10 = memref.load %arg1[%c3] : memref<6xf32, #tpu.memory_space<smem>>
    %11 = vector.broadcast %10 : f32 to vector<8x128xf32>
    %12 = arith.subf %9, %11 : vector<8x128xf32>
    %c1_7 = arith.constant 1 : index
    %13 = memref.load %arg1[%c1_7] : memref<6xf32, #tpu.memory_space<smem>>
    %14 = vector.broadcast %13 : f32 to vector<8x128xf32>
    %15 = arith.subf %3, %14 : vector<8x128xf32>
    %16 = math.absf %15 : vector<8x128xf32>
    %c4 = arith.constant 4 : index
    %17 = memref.load %arg1[%c4] : memref<6xf32, #tpu.memory_space<smem>>
    %18 = vector.broadcast %17 : f32 to vector<8x128xf32>
    %19 = arith.subf %16, %18 : vector<8x128xf32>
    %c2_8 = arith.constant 2 : index
    %20 = memref.load %arg1[%c2_8] : memref<6xf32, #tpu.memory_space<smem>>
    %21 = vector.broadcast %20 : f32 to vector<8x128xf32>
    %22 = arith.subf %5, %21 : vector<8x128xf32>
    %23 = math.absf %22 : vector<8x128xf32>
    %c5 = arith.constant 5 : index
    %24 = memref.load %arg1[%c5] : memref<6xf32, #tpu.memory_space<smem>>
    %25 = vector.broadcast %24 : f32 to vector<8x128xf32>
    %26 = arith.subf %23, %25 : vector<8x128xf32>
    %cst = arith.constant 0.000000e+00 : f32
    %27 = vector.broadcast %cst : f32 to vector<8x128xf32>
    %28 = arith.maximumf %12, %27 : vector<8x128xf32>
    %29 = arith.mulf %28, %28 : vector<8x128xf32>
    %cst_9 = arith.constant 0.000000e+00 : f32
    %30 = vector.broadcast %cst_9 : f32 to vector<8x128xf32>
    %31 = arith.maximumf %19, %30 : vector<8x128xf32>
    %32 = arith.mulf %31, %31 : vector<8x128xf32>
    %33 = arith.addf %29, %32 : vector<8x128xf32>
    %cst_10 = arith.constant 0.000000e+00 : f32
    %34 = vector.broadcast %cst_10 : f32 to vector<8x128xf32>
    %35 = arith.maximumf %26, %34 : vector<8x128xf32>
    %36 = arith.mulf %35, %35 : vector<8x128xf32>
    %37 = arith.addf %33, %36 : vector<8x128xf32>
    %38 = math.sqrt %37 : vector<8x128xf32>
    %39 = arith.maximumf %12, %19 : vector<8x128xf32>
    %40 = arith.maximumf %39, %26 : vector<8x128xf32>
    %cst_11 = arith.constant 0.000000e+00 : f32
    %41 = vector.broadcast %cst_11 : f32 to vector<8x128xf32>
    %42 = arith.minimumf %40, %41 : vector<8x128xf32>
    %43 = arith.addf %38, %42 : vector<8x128xf32>
    %c0_12 = arith.constant 0 : index
    %c0_13 = arith.constant 0 : index
    %44 = vector.load %arg3[%c0_12, %c0_13] : memref<8x128xf32, #tpu.memory_space<vmem>>, vector<8x128xf32>
    tpu.vector_store %arg3[%c0_12, %c0_13], %43 {strides = array<i32>} : memref<8x128xf32, #tpu.memory_space<vmem>>, vector<8x128xf32>,
    return
  }
  func.func @transform_0(%arg0: i32) -> i32 {
    %c0_i32 = arith.constant 0 : i32
    %c0_i32_0 = arith.constant 0 : i32
    return %c0_i32 : i32
  }
  func.func @transform_1(%arg0: i32) -> (i32, i32, i32) {
    %c0_i32 = arith.constant 0 : i32
    %c0_i32_0 = arith.constant 0 : i32
    %c0_i32_1 = arith.constant 0 : i32
    return %c0_i32, %arg0, %c0_i32_0 : i32, i32, i32
  }
  func.func @transform_2(%arg0: i32) -> (i32, i32) {
    %c0_i32 = arith.constant 0 : i32
    %c0_i32_0 = arith.constant 0 : i32
    return %arg0, %c0_i32 : i32, i32
  }
}

</mosaic_0001>

<bundles_post_ra>
// kernel: box_sdf.1
= control target key start
LH: loop header
LB: loop body
LE: loop exit
PB: predicated region body
PF: predicated region fallthrough
CT: control target
= control target key end

     0   :  { %7 = vsyncpa [#allocation3], 0  ;;  %s130_s0 = inlined_call_operand.vmem [shape: f32[6], index: 0, kind: input, shape index: {}]   ;;  %s131_s1 = inlined_call_operand.vmem [shape: f32[3,8,128], index: 1, kind: input, shape index: {}]   ;;  %s132_s2 = inlined_call_operand.vmem [shape: f32[8,128], index: 2, kind: output, shape index: {}]  }
   0x1   :  { %s14_s11 = sshll.u32 %s130_s0, 4  ;;  %s15_s11 = int_to_ptr.vmem [resolvable:$true] %s14_s11 }
   0x2   :  { %s85_s12 = scalar_lea.vmem %s15_s11, 16  ;;  %p90_p1 = scmp.lt.s32.totalorder %s15_s11, %s15_s11 }
   0x3   :  { %p86_p0 = scmp.ne.s32.totalorder %s15_s11, %s85_s12  ;;  %p91_p2 = scmp.lt.s32.totalorder %s85_s12, %s85_s12 }
   0x5   :  { %p92_p3 = por %p91_p2, %p90_p1 }
   0x7   :  { %p93_p4 = pnand %p92_p3, %p86_p0 }
   0x9   :  { %96 = shalt.err (!%p93_p4)
}
   0xa   :  { %s99_s13 = smov [#allocation2]  }
   0xb   :  { %17 = dma.vmem_to_smem %s15_s11, 16, %s99_s13, [#allocation3]  }
   0xc   :  { %97 = dma.done.wait [#allocation3], 16  }
   0xd   :  { %98 = vsyncadd [#allocation3], 4294967280 }
   0xe   :  { %23 = sfence }
   0xf   :  { %s29_s14 = sld [smem:[#allocation2]]  ;;  %s77_s15 = sld [smem:[#allocation2 + $0x3]]  ;;  %v24_v0 = vld [vmem:[%s131_s1] sm:$0xff]  ;;  %v75_v1 = vld [vmem:[%s131_s1 + $0x8] sm:$0xff]  ;;  %v76_v2 = vld [vmem:[%s131_s1 + $0x10] sm:$0xff] }
  0x10   :  { %s78_s16 = sld [smem:[#allocation2 + $0x1]]  ;;  %s79_s17 = sld [smem:[#allocation2 + $0x4]] }
  0x11   :  { %s80_s18 = sld [smem:[#allocation2 + $0x2]]  ;;  %s81_s19 = sld [smem:[#allocation2 + $0x5]] }
  0x15   :  { %v30_v3 = vstv %s29_s14  ;;  %v34_v6 = vstv %s77_s15 }
  0x16   :  { %v31_v4 = vsub.f32 %v24_v0, %v30_v3  ;;  %v37_v5 = vstv %s78_s16  ;;  %v41_v10 = vstv %s79_s17 }
  0x17   :  { %v38_v7 = vsub.f32 %v75_v1, %v37_v5  ;;  %v44_v8 = vstv %s80_s18  ;;  %v48_v13 = vstv %s81_s19 }
  0x18   :  { %v32_v9 = vand.u32 2147483647, %v31_v4  ;;  %v45_v11 = vsub.f32 %v76_v2, %v44_v8 }
  0x19   :  { %v39_v12 = vand.u32 2147483647, %v38_v7 }
  0x1a   :  { %v35_v14 = vsub.f32 %v32_v9, %v34_v6  ;;  %v46_v15 = vand.u32 2147483647, %v45_v11 }
  0x1b   :  { %v42_v16 = vsub.f32 %v39_v12, %v41_v10 }
  0x1c   :  { %v49_v17 = vsub.f32 %v46_v15, %v48_v13  ;;  %v50_v18 = vmax.f32 %v35_v14, 0.0 }
  0x1d   :  { %v52_v19 = vmax.f32 %v42_v16, 0.0  ;;  %v65_v26 = vmax.f32 %v35_v14, %v42_v16 }
  0x1e   :  { %v51_v20 = vmul.f32 %v50_v18, %v50_v18  ;;  %v55_v21 = vmax.f32 %v49_v17, 0.0 }
  0x1f   :  { %v53_v22 = vmul.f32 %v52_v19, %v52_v19  ;;  %v66_v27 = vmax.f32 %v65_v26, %v49_v17 }
  0x20   :  { %v56_v23 = vmul.f32 %v55_v21, %v55_v21 }
  0x21   :  { %v54_v24 = vadd.f32 %v53_v22, %v51_v20  ;;  %v67_v31 = vmin.f32 %v66_v27, 0.0 }
  0x23   :  { %v57_v25 = vadd.f32 %v56_v23, %v54_v24 }
  0x25   :  { %83 = vrsqrt.f32 %v57_v25  ;;  %vm60_vm0 = vcmp.eq.f32.partialorder %v57_v25, inf  ;;  %v63_v29 = vand.u32 2147483648, %v57_v25  ;;  %vm62_vm1 = vcmp.eq.f32.partialorder %v57_v25, 0.0 }
  0x2f   :  { %v84_v28 = vpop.eup %83 }
  0x30   :  { %v59_v30 = vmul.f32 %v84_v28, %v57_v25 }
  0x32   :  { %v61_v32 = vsel %vm60_vm0, %v57_v25, %v59_v30 }
  0x33   :  { %v64_v33 = vsel %vm62_vm1, %v63_v29, %v61_v32 }
  0x34   :  { %v68_v34 = vadd.f32 %v67_v31, %v64_v33 }
  0x36   :  { %69 = vst [vmem:[%s132_s2] sm:$0xff] %v68_v34 }
  0x37   :  { %74 = vsyncpa [#allocation3], 1 }

</bundles_post_ra>
